<compile_context>
chip_gen: v5e
topology: v5e:2x2
jax: 0.10.0
libtpu: 0.0.40
codegen_flags: <defaults>
</compile_context>

<pallas_src>
import numpy as np
import jax
import jax.numpy as jnp
from jax.experimental import pallas as pl
from jax.experimental.pallas import tpu as pltpu

# ---------------- SMEM scalar-vector layout ----------------
IDX_DATA_W, IDX_BODY_W, IDX_SHAPE_W, IDX_BEND_W = 0, 1, 2, 3
IDX_HAND_W, IDX_EXPR_W, IDX_JAW_W, IDX_RHO = 4, 5, 6, 7
IDX_R = 8           # 8..16  camera rotation, row-major
IDX_T = 17          # 17..19 camera translation
IDX_FX, IDX_FY, IDX_CX, IDX_CY = 20, 21, 22, 23
NUM_SCALARS = 24

# ---------------- joint slab plane layout: (8, LJ) with B*J on the lane axis --
ROW_JX, ROW_JY, ROW_JZ = 0, 1, 2
ROW_GTX, ROW_GTY = 3, 4
ROW_CONF, ROW_WGT, ROW_VALID = 5, 6, 7
NUM_JOINT_PLANES = 8

# ---------------- prior slab layout: (3 + B, 256) ----------------
# rows 0..2  : aux rows (L2 weight / angle sign / angle mask), batch-invariant
# rows 3..   : per-batch packed parameter vectors
PRIOR_WIDTH = 256
AUX_ROWS = 3
COL_BODY, N_BODY = 0, 63
COL_BETAS, N_BETAS = 63, 10
COL_LHAND, N_LHAND = 73, 12
COL_RHAND, N_RHAND = 85, 12
COL_EXPR, N_EXPR = 97, 10
COL_JAW, N_JAW = 107, 3
COL_POSE63, N_POSE63 = 128, 63     # full_pose[:, 3:66] (angle prior input)

# SMPLifyAnglePrior constants: indices [55,58,12,15]-3 into the 63-dim body pose
ANGLE_IDX = np.array([52, 55, 9, 12], dtype=np.int64)
ANGLE_SIGNS = np.array([1.0, -1.0, -1.0, -1.0], dtype=np.float32)


def _fast_recip(x):
    """1/x via the EUP approximate reciprocal + one Newton-Raphson step.

    The EUP seed issues in its own VLIW slot (essentially free here); the NR
    step (2 cheap VPU ops) restores ~f32 accuracy (rel. err ~ eps_approx^2),
    keeping the divide off the serialized VALU divide path.
    """
    r = pl.reciprocal(x, approx=True)
    return r * (2.0 - x * r)


def smplify_loss_kernel(scal_ref, jslab_ref, pslab_ref, out_ref):
    rho = scal_ref[IDX_RHO]
    rho2 = rho * rho

    # ---- perspective camera projection on lane-dense (1, LJ) planes.  The
    #      3x3 rotation is scalar-broadcast VPU FMAs (MXU with K=N=3 would
    #      waste the systolic array).
    jx = jslab_ref[ROW_JX:ROW_JX + 1, :]
    jy = jslab_ref[ROW_JY:ROW_JY + 1, :]
    jz = jslab_ref[ROW_JZ:ROW_JZ + 1, :]
    px = (scal_ref[IDX_R + 0] * jx + scal_ref[IDX_R + 1] * jy
          + scal_ref[IDX_R + 2] * jz + scal_ref[IDX_T + 0])
    py = (scal_ref[IDX_R + 3] * jx + scal_ref[IDX_R + 4] * jy
          + scal_ref[IDX_R + 5] * jz + scal_ref[IDX_T + 1])
    pz = (scal_ref[IDX_R + 6] * jx + scal_ref[IDX_R + 7] * jy
          + scal_ref[IDX_R + 8] * jz + scal_ref[IDX_T + 2])
    inv_z = _fast_recip(pz)
    proj_x = scal_ref[IDX_FX] * px * inv_z + scal_ref[IDX_CX]
    proj_y = scal_ref[IDX_FY] * py * inv_z + scal_ref[IDX_CY]

    # ---- robustified (GMoF) re-projection loss ----
    dx = jslab_ref[ROW_GTX:ROW_GTX + 1, :] - proj_x
    dy = jslab_ref[ROW_GTY:ROW_GTY + 1, :] - proj_y
    dx2 = dx * dx
    dy2 = dy * dy
    gx = rho2 * dx2 * _fast_recip(dx2 + rho2)
    gy = rho2 * dy2 * _fast_recip(dy2 + rho2)
    w = jslab_ref[ROW_WGT:ROW_WGT + 1, :] * jslab_ref[ROW_CONF:ROW_CONF + 1, :]
    contrib = w * w * (gx + gy)
    # select (not multiply) so NaN/inf in padded lanes can never leak.
    valid = jslab_ref[ROW_VALID:ROW_VALID + 1, :]
    joint_sum = jnp.sum(jnp.where(valid > 0.5, contrib, 0.0))

    # ---- all priors fused: one elementwise expression + ONE cross-lane reduce
    #      (w_row*p)^2               -> L2 body/shape/hand/expr/jaw priors
    #                                   (weights baked per column into w_row)
    #      bend_w*mask*exp(2*sign*p) -> SMPLify angle (bending) prior
    ps = pslab_ref[...]                      # (3 + B, 256) lane-dense slab
    w_row = ps[0:1, :]
    sign_row = ps[1:2, :]
    mask_row = ps[2:3, :]
    p = ps[AUX_ROWS:, :]                     # (B, 256)
    wp = w_row * p
    prior_elem = wp * wp + (scal_ref[IDX_BEND_W] * mask_row) * jnp.exp(2.0 * sign_row * p)
    prior_sum = jnp.sum(prior_elem)

    data_w = scal_ref[IDX_DATA_W]
    out_ref[0, 0] = joint_sum * (data_w * data_w) + prior_sum


# ---------------- wrapper-side packing (layout plumbing; fuses under jit) ----


def _pack_joint_slab(joints, gt_joints, joints_conf, joint_weights):
    """Flatten B*J onto the lane axis -> (8, LJ) with LJ a multiple of 128."""
    B, J, _ = joints.shape
    n = B * J
    lj = max(128, ((n + 127) // 128) * 128)
    f32 = jnp.float32

    def flat(x):
        return x.astype(f32).reshape(1, n)

    slab = jnp.concatenate(
        [flat(joints[..., 0]), flat(joints[..., 1]), flat(joints[..., 2]),
         flat(gt_joints[..., 0]), flat(gt_joints[..., 1]),
         flat(joints_conf), flat(joint_weights),
         jnp.ones((1, n), f32)], axis=0)                       # (8, n)
    if lj > n:
        slab = jnp.pad(slab, ((0, 0), (0, lj - n)))
    return slab                                                # (8, LJ)


def _build_aux(scalars):
    # per-column L2 weight row = constant 0/1 segment masks x module weights
    seg = np.zeros((5, PRIOR_WIDTH), np.float32)
    seg[0, COL_BODY:COL_BODY + N_BODY] = 1.0        # body_pose_weight
    seg[1, COL_BETAS:COL_BETAS + N_BETAS] = 1.0     # shape_weight
    seg[2, COL_LHAND:COL_RHAND + N_RHAND] = 1.0     # hand_prior_weight (both hands)
    seg[3, COL_EXPR:COL_EXPR + N_EXPR] = 1.0        # expr_prior_weight
    seg[4, COL_JAW:COL_JAW + N_JAW] = 1.0           # jaw_prior_weight
    wvec = jnp.stack([scalars[IDX_BODY_W], scalars[IDX_SHAPE_W],
                      scalars[IDX_HAND_W], scalars[IDX_EXPR_W],
                      scalars[IDX_JAW_W]])
    w_row = wvec @ jnp.asarray(seg)                 # (256,)

    sign_np = np.zeros((PRIOR_WIDTH,), np.float32)
    mask_np = np.zeros((PRIOR_WIDTH,), np.float32)
    sign_np[COL_POSE63 + ANGLE_IDX] = ANGLE_SIGNS
    mask_np[COL_POSE63 + ANGLE_IDX] = 1.0
    return jnp.stack([w_row, jnp.asarray(sign_np), jnp.asarray(mask_np)],
                     axis=0)                        # (3, 256)


def _pack_prior_slab(scalars, body_pose, betas, lhand, rhand, expression,
                     jaw_pose, pose63):
    B = body_pose.shape[0]
    f32 = jnp.float32
    pad_mid = jnp.zeros((B, COL_POSE63 - (COL_JAW + N_JAW)), f32)
    pad_end = jnp.zeros((B, PRIOR_WIDTH - (COL_POSE63 + N_POSE63)), f32)
    pvals = jnp.concatenate(
        [body_pose, betas, lhand, rhand, expression, jaw_pose,
         pad_mid, pose63, pad_end], axis=1).astype(f32)        # (B, 256)
    aux = _build_aux(scalars)                                  # (3, 256)
    return jnp.concatenate([aux, pvals], axis=0)               # (3+B, 256)


def _smplify_loss_impl(scalars, joints, gt_joints, joints_conf, joint_weights,
                       body_pose, betas, lhand, rhand, expression, jaw_pose,
                       pose63):
    jslab = _pack_joint_slab(joints, gt_joints, joints_conf, joint_weights)
    pslab = _pack_prior_slab(scalars, body_pose, betas, lhand, rhand,
                             expression, jaw_pose, pose63)
    # No grid at these sizes: total input is a few KB, so a grid only adds
    # per-step overhead (~0.35us/step).  For large-B fitting (many frames or
    # hypotheses), tile the B*J lane axis / the prior-slab row axis with
    # grid=(nblk,), dimension_semantics=("parallel",) and per-block partial
    # sums reduced in the wrapper; size blocks against 64 MiB VMEM on v7x
    # (vs 128 MiB on v5e/v6e).
    out = pl.pallas_call(
        smplify_loss_kernel,
        out_shape=jax.ShapeDtypeStruct((1, 1), jnp.float32),
        in_specs=[pl.BlockSpec(memory_space=pltpu.MemorySpace.SMEM),
                  pl.BlockSpec(memory_space=pltpu.MemorySpace.VMEM),
                  pl.BlockSpec(memory_space=pltpu.MemorySpace.VMEM)],
        out_specs=pl.BlockSpec(memory_space=pltpu.MemorySpace.SMEM),
    )(scalars, jslab, pslab)
    return out[0, 0]


# jit so the tiny packing ops fuse with the pallas_call; in a real fitting loop
# this should additionally be jitted together with the optimizer step so the
# fixed launch cost is amortized.
smplify_loss = jax.jit(_smplify_loss_impl)


# ---------------- pure-JAX/NumPy reference (matches the PyTorch module) ------


def reference_loss(scalars, joints, gt_joints, joints_conf, joint_weights,
                   body_pose, betas, lhand, rhand, expression, jaw_pose,
                   pose63, angle_idx, angle_signs):
    s = np.asarray(scalars)
    R = s[IDX_R:IDX_R + 9].reshape(3, 3)
    t = s[IDX_T:IDX_T + 3]
    foc = np.array([s[IDX_FX], s[IDX_FY]])
    cen = np.array([s[IDX_CX], s[IDX_CY]])
    rho = s[IDX_RHO]

    pts = joints @ R.T + t
    proj = foc * pts[..., :2] / pts[..., 2:3] + cen
    diff = gt_joints - proj
    sq = diff ** 2
    robust = rho ** 2 * sq / (sq + rho ** 2)
    w = (joint_weights * joints_conf)[..., None]
    joint_loss = np.sum(w ** 2 * robust) * s[IDX_DATA_W] ** 2

    pprior = np.sum(body_pose ** 2) * s[IDX_BODY_W] ** 2
    shape = np.sum(betas ** 2) * s[IDX_SHAPE_W] ** 2
    ang = np.sum(np.exp(pose63[:, angle_idx] * angle_signs) ** 2) * s[IDX_BEND_W]
    lh = np.sum(lhand ** 2) * s[IDX_HAND_W] ** 2
    rh = np.sum(rhand ** 2) * s[IDX_HAND_W] ** 2
    ex = np.sum(expression ** 2) * s[IDX_EXPR_W] ** 2
    jw = np.sum((jaw_pose * s[IDX_JAW_W]) ** 2)
    return joint_loss + pprior + shape + ang + jw + ex + lh + rh


if __name__ == "__main__":
    B, J = 2, 24
    key = jax.random.PRNGKey(0)
    keys = jax.random.split(key, 12)

    f32 = jnp.float32
    joints = (jax.random.normal(keys[0], (B, J, 3)) * 0.5).astype(f32)      # 3D body joints
    gt_joints = (jax.random.normal(keys[1], (B, J, 2)) * 50.0 + 112.0).astype(f32)
    joints_conf = jax.random.uniform(keys[2], (B, J)).astype(f32)
    joint_weights = jax.random.uniform(keys[3], (B, J)).astype(f32)
    body_pose = (jax.random.normal(keys[4], (B, 63)) * 0.1).astype(f32)
    betas = (jax.random.normal(keys[5], (B, 10)) * 0.5).astype(f32)
    lhand = (jax.random.normal(keys[6], (B, 12)) * 0.2).astype(f32)
    rhand = (jax.random.normal(keys[7], (B, 12)) * 0.2).astype(f32)
    expression = (jax.random.normal(keys[8], (B, 10)) * 0.3).astype(f32)
    jaw_pose = (jax.random.normal(keys[9], (B, 3)) * 0.1).astype(f32)
    full_pose = (jax.random.normal(keys[10], (B, 165)) * 0.1).astype(f32)
    pose63 = full_pose[:, 3:66]                                             # full_pose[:, 3:66]

    # deterministic module weights + camera params (buffers of the module)
    scalars_np = np.zeros((NUM_SCALARS,), dtype=np.float32)
    scalars_np[IDX_DATA_W] = 1.0
    scalars_np[IDX_BODY_W] = 0.5
    scalars_np[IDX_SHAPE_W] = 0.3
    scalars_np[IDX_BEND_W] = 0.7
    scalars_np[IDX_HAND_W] = 0.2
    scalars_np[IDX_EXPR_W] = 0.4
    scalars_np[IDX_JAW_W] = 0.6
    scalars_np[IDX_RHO] = 100.0
    scalars_np[IDX_R:IDX_R + 9] = np.eye(3, dtype=np.float32).reshape(-1)   # camera rotation
    scalars_np[IDX_T:IDX_T + 3] = np.array([0.0, 0.0, 10.0], np.float32)    # camera translation
    scalars_np[IDX_FX], scalars_np[IDX_FY] = 500.0, 500.0                   # focal length
    scalars_np[IDX_CX], scalars_np[IDX_CY] = 112.0, 112.0                   # principal point
    scalars = jnp.asarray(scalars_np)

    total = smplify_loss(scalars, joints, gt_joints, joints_conf, joint_weights,
                         body_pose, betas, lhand, rhand, expression, jaw_pose,
                         pose63)
    total = jax.block_until_ready(total)

    ref = reference_loss(np.asarray(scalars), np.asarray(joints), np.asarray(gt_joints),
                         np.asarray(joints_conf), np.asarray(joint_weights),
                         np.asarray(body_pose), np.asarray(betas),
                         np.asarray(lhand), np.asarray(rhand),
                         np.asarray(expression), np.asarray(jaw_pose),
                         np.asarray(pose63), ANGLE_IDX, ANGLE_SIGNS)

    # Tolerance has headroom for the EUP approximate-reciprocal path; with the
    # added Newton-Raphson step the expected relative error is ~1e-7.
    np.testing.assert_allclose(np.asarray(total), np.asarray(ref), rtol=5e-4, atol=5e-4)
    print("KERNEL_OK")
</pallas_src>

<mosaic_0001>
module attributes {stable_mosaic.version = 11 : i64} {
  func.func @smplify_loss_kernel(%arg0: memref<24xf32, #tpu.memory_space<smem>>, %arg1: memref<8x128xf32, #tpu.memory_space<vmem>>, %arg2: memref<5x256xf32, #tpu.memory_space<vmem>>, %arg3: memref<1x1xf32, #tpu.memory_space<smem>>) attributes {dimension_semantics = [], scalar_prefetch = 0 : i64, scratch_operands = 0 : i64, tpu.core_type = #tpu.core_type<tc>} {
    %c7 = arith.constant 7 : index
    %0 = memref.load %arg0[%c7] : memref<24xf32, #tpu.memory_space<smem>>
    %1 = arith.mulf %0, %0 : f32
    %c0 = arith.constant 0 : index
    %c0_0 = arith.constant 0 : index
    %2 = vector.load %arg1[%c0, %c0_0] : memref<8x128xf32, #tpu.memory_space<vmem>>, vector<1x128xf32>
    %c1 = arith.constant 1 : index
    %c0_1 = arith.constant 0 : index
    %3 = vector.load %arg1[%c1, %c0_1] : memref<8x128xf32, #tpu.memory_space<vmem>>, vector<1x128xf32>
    %c2 = arith.constant 2 : index
    %c0_2 = arith.constant 0 : index
    %4 = vector.load %arg1[%c2, %c0_2] : memref<8x128xf32, #tpu.memory_space<vmem>>, vector<1x128xf32>
    %c8 = arith.constant 8 : index
    %5 = memref.load %arg0[%c8] : memref<24xf32, #tpu.memory_space<smem>>
    %6 = vector.broadcast %5 : f32 to vector<1x128xf32>
    %7 = arith.mulf %6, %2 : vector<1x128xf32>
    %c9 = arith.constant 9 : index
    %8 = memref.load %arg0[%c9] : memref<24xf32, #tpu.memory_space<smem>>
    %9 = vector.broadcast %8 : f32 to vector<1x128xf32>
    %10 = arith.mulf %9, %3 : vector<1x128xf32>
    %11 = arith.addf %7, %10 : vector<1x128xf32>
    %c10 = arith.constant 10 : index
    %12 = memref.load %arg0[%c10] : memref<24xf32, #tpu.memory_space<smem>>
    %13 = vector.broadcast %12 : f32 to vector<1x128xf32>
    %14 = arith.mulf %13, %4 : vector<1x128xf32>
    %15 = arith.addf %11, %14 : vector<1x128xf32>
    %c17 = arith.constant 17 : index
    %16 = memref.load %arg0[%c17] : memref<24xf32, #tpu.memory_space<smem>>
    %17 = vector.broadcast %16 : f32 to vector<1x128xf32>
    %18 = arith.addf %15, %17 : vector<1x128xf32>
    %c11 = arith.constant 11 : index
    %19 = memref.load %arg0[%c11] : memref<24xf32, #tpu.memory_space<smem>>
    %20 = vector.broadcast %19 : f32 to vector<1x128xf32>
    %21 = arith.mulf %20, %2 : vector<1x128xf32>
    %c12 = arith.constant 12 : index
    %22 = memref.load %arg0[%c12] : memref<24xf32, #tpu.memory_space<smem>>
    %23 = vector.broadcast %22 : f32 to vector<1x128xf32>
    %24 = arith.mulf %23, %3 : vector<1x128xf32>
    %25 = arith.addf %21, %24 : vector<1x128xf32>
    %c13 = arith.constant 13 : index
    %26 = memref.load %arg0[%c13] : memref<24xf32, #tpu.memory_space<smem>>
    %27 = vector.broadcast %26 : f32 to vector<1x128xf32>
    %28 = arith.mulf %27, %4 : vector<1x128xf32>
    %29 = arith.addf %25, %28 : vector<1x128xf32>
    %c18 = arith.constant 18 : index
    %30 = memref.load %arg0[%c18] : memref<24xf32, #tpu.memory_space<smem>>
    %31 = vector.broadcast %30 : f32 to vector<1x128xf32>
    %32 = arith.addf %29, %31 : vector<1x128xf32>
    %c14 = arith.constant 14 : index
    %33 = memref.load %arg0[%c14] : memref<24xf32, #tpu.memory_space<smem>>
    %34 = vector.broadcast %33 : f32 to vector<1x128xf32>
    %35 = arith.mulf %34, %2 : vector<1x128xf32>
    %c15 = arith.constant 15 : index
    %36 = memref.load %arg0[%c15] : memref<24xf32, #tpu.memory_space<smem>>
    %37 = vector.broadcast %36 : f32 to vector<1x128xf32>
    %38 = arith.mulf %37, %3 : vector<1x128xf32>
    %39 = arith.addf %35, %38 : vector<1x128xf32>
    %c16 = arith.constant 16 : index
    %40 = memref.load %arg0[%c16] : memref<24xf32, #tpu.memory_space<smem>>
    %41 = vector.broadcast %40 : f32 to vector<1x128xf32>
    %42 = arith.mulf %41, %4 : vector<1x128xf32>
    %43 = arith.addf %39, %42 : vector<1x128xf32>
    %c19 = arith.constant 19 : index
    %44 = memref.load %arg0[%c19] : memref<24xf32, #tpu.memory_space<smem>>
    %45 = vector.broadcast %44 : f32 to vector<1x128xf32>
    %46 = arith.addf %43, %45 : vector<1x128xf32>
    %47 = tpu.reciprocal %46 {approx = true} : vector<1x128xf32> -> vector<1x128xf32>
    %48 = arith.mulf %46, %47 : vector<1x128xf32>
    %cst = arith.constant 2.000000e+00 : f32
    %49 = vector.broadcast %cst : f32 to vector<1x128xf32>
    %50 = arith.subf %49, %48 : vector<1x128xf32>
    %51 = arith.mulf %47, %50 : vector<1x128xf32>
    %c20 = arith.constant 20 : index
    %52 = memref.load %arg0[%c20] : memref<24xf32, #tpu.memory_space<smem>>
    %53 = vector.broadcast %52 : f32 to vector<1x128xf32>
    %54 = arith.mulf %53, %18 : vector<1x128xf32>
    %55 = arith.mulf %54, %51 : vector<1x128xf32>
    %c22 = arith.constant 22 : index
    %56 = memref.load %arg0[%c22] : memref<24xf32, #tpu.memory_space<smem>>
    %57 = vector.broadcast %56 : f32 to vector<1x128xf32>
    %58 = arith.addf %55, %57 : vector<1x128xf32>
    %c21 = arith.constant 21 : index
    %59 = memref.load %arg0[%c21] : memref<24xf32, #tpu.memory_space<smem>>
    %60 = vector.broadcast %59 : f32 to vector<1x128xf32>
    %61 = arith.mulf %60, %32 : vector<1x128xf32>
    %62 = arith.mulf %61, %51 : vector<1x128xf32>
    %c23 = arith.constant 23 : index
    %63 = memref.load %arg0[%c23] : memref<24xf32, #tpu.memory_space<smem>>
    %64 = vector.broadcast %63 : f32 to vector<1x128xf32>
    %65 = arith.addf %62, %64 : vector<1x128xf32>
    %c3 = arith.constant 3 : index
    %c0_3 = arith.constant 0 : index
    %66 = vector.load %arg1[%c3, %c0_3] : memref<8x128xf32, #tpu.memory_space<vmem>>, vector<1x128xf32>
    %67 = arith.subf %66, %58 : vector<1x128xf32>
    %c4 = arith.constant 4 : index
    %c0_4 = arith.constant 0 : index
    %68 = vector.load %arg1[%c4, %c0_4] : memref<8x128xf32, #tpu.memory_space<vmem>>, vector<1x128xf32>
    %69 = arith.subf %68, %65 : vector<1x128xf32>
    %70 = arith.mulf %67, %67 : vector<1x128xf32>
    %71 = arith.mulf %69, %69 : vector<1x128xf32>
    %72 = vector.broadcast %1 : f32 to vector<1x128xf32>
    %73 = arith.mulf %72, %70 : vector<1x128xf32>
    %74 = vector.broadcast %1 : f32 to vector<1x128xf32>
    %75 = arith.addf %70, %74 : vector<1x128xf32>
    %76 = tpu.reciprocal %75 {approx = true} : vector<1x128xf32> -> vector<1x128xf32>
    %77 = arith.mulf %75, %76 : vector<1x128xf32>
    %cst_5 = arith.constant 2.000000e+00 : f32
    %78 = vector.broadcast %cst_5 : f32 to vector<1x128xf32>
    %79 = arith.subf %78, %77 : vector<1x128xf32>
    %80 = arith.mulf %76, %79 : vector<1x128xf32>
    %81 = arith.mulf %73, %80 : vector<1x128xf32>
    %82 = vector.broadcast %1 : f32 to vector<1x128xf32>
    %83 = arith.mulf %82, %71 : vector<1x128xf32>
    %84 = vector.broadcast %1 : f32 to vector<1x128xf32>
    %85 = arith.addf %71, %84 : vector<1x128xf32>
    %86 = tpu.reciprocal %85 {approx = true} : vector<1x128xf32> -> vector<1x128xf32>
    %87 = arith.mulf %85, %86 : vector<1x128xf32>
    %cst_6 = arith.constant 2.000000e+00 : f32
    %88 = vector.broadcast %cst_6 : f32 to vector<1x128xf32>
    %89 = arith.subf %88, %87 : vector<1x128xf32>
    %90 = arith.mulf %86, %89 : vector<1x128xf32>
    %91 = arith.mulf %83, %90 : vector<1x128xf32>
    %c6 = arith.constant 6 : index
    %c0_7 = arith.constant 0 : index
    %92 = vector.load %arg1[%c6, %c0_7] : memref<8x128xf32, #tpu.memory_space<vmem>>, vector<1x128xf32>
    %c5 = arith.constant 5 : index
    %c0_8 = arith.constant 0 : index
    %93 = vector.load %arg1[%c5, %c0_8] : memref<8x128xf32, #tpu.memory_space<vmem>>, vector<1x128xf32>
    %94 = arith.mulf %92, %93 : vector<1x128xf32>
    %95 = arith.mulf %94, %94 : vector<1x128xf32>
    %96 = arith.addf %81, %91 : vector<1x128xf32>
    %97 = arith.mulf %95, %96 : vector<1x128xf32>
    %c7_9 = arith.constant 7 : index
    %c0_10 = arith.constant 0 : index
    %98 = vector.load %arg1[%c7_9, %c0_10] : memref<8x128xf32, #tpu.memory_space<vmem>>, vector<1x128xf32>
    %cst_11 = arith.constant 5.000000e-01 : f32
    %99 = vector.broadcast %cst_11 : f32 to vector<1x128xf32>
    %100 = arith.cmpf ogt, %98, %99 : vector<1x128xf32>
    %cst_12 = arith.constant 0.000000e+00 : f32
    %101 = vector.broadcast %cst_12 : f32 to vector<1x128xf32>
    %102 = arith.select %100, %97, %101 : vector<1x128xi1>, vector<1x128xf32>
    %103 = vector.shape_cast %102 : vector<1x128xf32> to vector<1x1x128xf32>
    %cst_13 = arith.constant dense<0.000000e+00> : vector<1xf32>
    %104 = vector.multi_reduction <add>, %103, %cst_13 [1, 2] : vector<1x1x128xf32> to vector<1xf32>
    %105 = vector.shape_cast %104 : vector<1xf32> to vector<1x1x1xf32>
    %106 = vector.extract %105[0, 0, 0] : f32 from vector<1x1x1xf32>
    %c0_14 = arith.constant 0 : index
    %c0_15 = arith.constant 0 : index
    %107 = vector.load %arg2[%c0_14, %c0_15] : memref<5x256xf32, #tpu.memory_space<vmem>>, vector<5x256xf32>
    %108 = vector.extract_strided_slice %107 {offsets = [0, 0], sizes = [1, 256], strides = [1, 1]} : vector<5x256xf32> to vector<1x256xf32>
    %109 = vector.extract_strided_slice %107 {offsets = [1, 0], sizes = [1, 256], strides = [1, 1]} : vector<5x256xf32> to vector<1x256xf32>
    %110 = vector.extract_strided_slice %107 {offsets = [2, 0], sizes = [1, 256], strides = [1, 1]} : vector<5x256xf32> to vector<1x256xf32>
    %111 = vector.extract_strided_slice %107 {offsets = [3, 0], sizes = [2, 256], strides = [1, 1]} : vector<5x256xf32> to vector<2x256xf32>
    %112 = vector.broadcast %108 : vector<1x256xf32> to vector<2x256xf32>
    %113 = arith.mulf %112, %111 : vector<2x256xf32>
    %114 = arith.mulf %113, %113 : vector<2x256xf32>
    %c3_16 = arith.constant 3 : index
    %115 = memref.load %arg0[%c3_16] : memref<24xf32, #tpu.memory_space<smem>>
    %116 = vector.broadcast %115 : f32 to vector<1x256xf32>
    %117 = arith.mulf %116, %110 : vector<1x256xf32>
    %cst_17 = arith.constant 2.000000e+00 : f32
    %118 = vector.broadcast %cst_17 : f32 to vector<1x256xf32>
    %119 = arith.mulf %118, %109 : vector<1x256xf32>
    %120 = vector.broadcast %119 : vector<1x256xf32> to vector<2x256xf32>
    %121 = arith.mulf %120, %111 : vector<2x256xf32>
    %122 = math.exp %121 : vector<2x256xf32>
    %123 = vector.broadcast %117 : vector<1x256xf32> to vector<2x256xf32>
    %124 = arith.mulf %123, %122 : vector<2x256xf32>
    %125 = arith.addf %114, %124 : vector<2x256xf32>
    %126 = vector.shape_cast %125 : vector<2x256xf32> to vector<1x2x256xf32>
    %cst_18 = arith.constant dense<0.000000e+00> : vector<1xf32>
    %127 = vector.multi_reduction <add>, %126, %cst_18 [1, 2] : vector<1x2x256xf32> to vector<1xf32>
    %128 = vector.shape_cast %127 : vector<1xf32> to vector<1x1x1xf32>
    %129 = vector.extract %128[0, 0, 0] : f32 from vector<1x1x1xf32>
    %c0_19 = arith.constant 0 : index
    %130 = memref.load %arg0[%c0_19] : memref<24xf32, #tpu.memory_space<smem>>
    %131 = arith.mulf %130, %130 : f32
    %132 = arith.mulf %106, %131 : f32
    %133 = arith.addf %132, %129 : f32
    %c0_20 = arith.constant 0 : index
    %c0_21 = arith.constant 0 : index
    %134 = memref.load %arg3[%c0_20, %c0_21] : memref<1x1xf32, #tpu.memory_space<smem>>
    memref.store %133, %arg3[%c0_20, %c0_21] : memref<1x1xf32, #tpu.memory_space<smem>>
    return
  }
}

</mosaic_0001>

<bundles_post_ra>
// kernel: squeeze.8
= control target key start
LH: loop header
LB: loop body
LE: loop exit
PB: predicated region body
PF: predicated region fallthrough
CT: control target
= control target key end

     0   :  { %vm7_vm0 = vcmask 195584   ;;  %vm13_vm1 = vcmask 392384   ;;  %s39_s0 = inlined_call_operand.vmem [shape: f32[2,24,1], index: 0, kind: input, shape index: {}]   ;;  %s40_s1 = inlined_call_operand.vmem [shape: f32[1,48], index: 1, kind: output, shape index: {}]  }
   0x1   :  { %v4_v0 = vld [vmem:[%s39_s0] sm:$0x3]  ;;  %s22_s0 = smov 24  }
   0x2   :  { %5 = vst [vmem:[#allocation1] sm:$0x3] %v4_v0 }
   0x9   :  { %v10_v1 = vld [vmem:[#allocation1 + $0x1] sm:$0x1]   ;;  %v6_v2 = vld [vmem:[#allocation1] sm:$0x1]  }
   0xa   :  { %11 = vrot.lane.b32.xlu0 %v10_v1, %s22_s0  ;;  %8 = vst.msk [vmem:[#allocation0] sm:$0x1] %vm7_vm0, %v6_v2  }
  0x7c   :  { %v12_v3 = vpop.permute.xlu0 %11  }
  0x7d   :  { %14 = vst.msk [vmem:[#allocation0] sm:$0x1] %vm13_vm1, %v12_v3  }
  0x84   :  { %v17_v4 = vld [vmem:[#allocation0] sm:$0x1] }
  0x85   :  { %20 = vst [vmem:[%s40_s1] sm:$0x1] %v17_v4 }

// kernel: _smplify_loss_impl.1
= control target key start
LH: loop header
LB: loop body
LE: loop exit
PB: predicated region body
PF: predicated region fallthrough
CT: control target
= control target key end

     0   :  { %8 = vsyncpa [#allocation4], 0  ;;  %s329_s0 = inlined_call_operand.vmem [shape: f32[24], index: 0, kind: input, shape index: {}]   ;;  %s330_s1 = inlined_call_operand.vmem [shape: f32[8,128], index: 1, kind: input, shape index: {}]   ;;  %s331_s2 = inlined_call_operand.vmem [shape: f32[5,256], index: 2, kind: input, shape index: {}]   ;;  %s332_s3 = inlined_call_operand.hbm [shape: f32[1,1], index: 3, kind: output, shape index: {}]  }
   0x1   :  { %9 = vsyncpa [#allocation3], 0  ;;  %s15_s14 = sshll.u32 %s329_s0, 4  ;;  %s265_s15 = smov [#allocation2]   ;;  %s16_s14 = int_to_ptr.vmem [resolvable:$true] %s15_s14 }
   0x2   :  { %18 = dma.vmem_to_smem %s16_s14, 16, %s265_s15, [#allocation4]  }
   0x3   :  { %261 = dma.done.wait [#allocation4], 16  }
   0x4   :  { %262 = vsyncadd [#allocation4], 4294967280 }
   0x5   :  { %27 = sfence }
   0x6   :  { %s204_s16 = sld [smem:[#allocation2 + $0x8]]  ;;  %v30_v0 = vld [vmem:[%s330_s1] sm:$0x1]  ;;  %v31_v1 = vld [vmem:[%s330_s1 + $0x1] sm:$0x1]  ;;  %vm123_vm1 = vcmask 1040384  }
   0x7   :  { %s205_s17 = sld [smem:[#allocation2 + $0x9]]  ;;  %v32_v2 = vld [vmem:[%s330_s1 + $0x2] sm:$0x1]  ;;  %v135_v37 = vld [vmem:[%s331_s2 + $0x8] sm:$0x1f]  ;;  %vm168_vm2 = vcmask 1041408  }
   0x8   :  { %s290_s18 = sld [smem:[#allocation2 + $0xa]]  ;;  %v134_v31 = vld [vmem:[%s331_s2] sm:$0x1f]  ;;  %v147_v43 = vmul.f32 2.0, %v135_v37  ;;  %s192_s29 = sshll.u32 %s332_s3, 4  ;;  %s193_s29 = int_to_ptr.hbm [resolvable:$true] %s192_s29 }
   0x9   :  { %s208_s19 = sld [smem:[#allocation2 + $0xb]]  ;;  %v146_v38 = vmul.f32 2.0, %v134_v31  ;;  %v93_v51 = vld [vmem:[%s330_s1 + $0x3] sm:$0x1]  ;;  %v95_v52 = vld [vmem:[%s330_s1 + $0x4] sm:$0x1] }
   0xa   :  { %s209_s20 = sld [smem:[#allocation2 + $0xc]]  ;;  %v149_v50 = vperm.slane %v147_v43, 1 }
   0xb   :  { %s292_s21 = sld [smem:[#allocation2 + $0xd]]  ;;  %v148_v44 = vperm.slane %v146_v38, 1 }
   0xc   :  { %s212_s22 = sld [smem:[#allocation2 + $0xe]]  ;;  %v34_v3 = vstv %s204_s16  ;;  %v151_v58 = vmul.f32 %v149_v50, %v135_v37 }
   0xd   :  { %s213_s23 = sld [smem:[#allocation2 + $0xf]]  ;;  %v37_v4 = vstv %s205_s17  ;;  %v35_v10 = vmul.f32 %v34_v3, %v30_v0  ;;  %v150_v53 = vmul.f32 %v148_v44, %v134_v31  ;;  %v136_v3 = vperm.slane %v134_v31, 0 }
   0xe   :  { %s214_s24 = sld [smem:[#allocation2 + $0x10]]  ;;  %v38_v13 = vmul.f32 %v37_v4, %v31_v1  ;;  %v41_v17 = vstv %s290_s18  ;;  %v137_v4 = vperm.slane %v135_v37, 0 }
   0xf   :  { %s215_s25 = sld [smem:[#allocation2 + $0x13]]  ;;  %v48_v5 = vstv %s208_s19  ;;  %v42_v23 = vmul.f32 %v41_v17, %v32_v2  ;;  %v152_v60 = vmul.f32 1.442695, %v150_v53 }
  0x10   :  { %v51_v6 = vstv %s209_s20  ;;  %s207_s4 = sld [smem:[#allocation2 + $0x11]]  ;;  %v49_v14 = vmul.f32 %v48_v5, %v30_v0  ;;  %v39_v22 = vadd.f32 %v38_v13, %v35_v10  ;;  %v115_v13 = vld [vmem:[%s330_s1 + $0x5] sm:$0x1] }
  0x11   :  { %v52_v15 = vmul.f32 %v51_v6, %v31_v1  ;;  %v55_v18 = vstv %s292_s21  ;;  %s211_s5 = sld [smem:[#allocation2 + $0x12]] }
  0x12   :  { %v62_v7 = vstv %s212_s22  ;;  %v56_v25 = vmul.f32 %v55_v18, %v32_v2  ;;  %s216_s6 = sld [smem:[#allocation2 + $0x14]]  ;;  %v43_v27 = vadd.f32 %v42_v23, %v39_v22 }
  0x13   :  { %v63_v8 = vmul.f32 %v62_v7, %v30_v0  ;;  %v65_v9 = vstv %s213_s23  ;;  %v53_v24 = vadd.f32 %v52_v15, %v49_v14  ;;  %s218_s7 = sld [smem:[#allocation2 + $0x15]]  ;;  %v139_v14 = vmul.f32 %v137_v4, %v135_v37 }
  0x14   :  { %v66_v11 = vmul.f32 %v65_v9, %v31_v1  ;;  %v69_v12 = vstv %s214_s24  ;;  %s217_s8 = sld [smem:[#allocation2 + $0x16]]  ;;  %v154_v1 = vmul.f32 1.442695, %v151_v58  ;;  %v138_v9 = vmul.f32 %v136_v3, %v134_v31 }
  0x15   :  { %v70_v16 = vmul.f32 %v69_v12, %v32_v2  ;;  %v73_v20 = vstv %s215_s25  ;;  %v57_v28 = vadd.f32 %v56_v25, %v53_v24  ;;  %s219_s11 = sld [smem:[#allocation2 + $0x17]]  ;;  %v114_v12 = vld [vmem:[%s330_s1 + $0x6] sm:$0x1] }
  0x16   :  { %v67_v19 = vadd.f32 %v66_v11, %v63_v8  ;;  %v45_v29 = vstv %s207_s4  ;;  %s203_s12 = sld [smem:[#allocation2 + $0x7]]  ;;  %v116_v23 = vmul.f32 %v115_v13, %v114_v12  ;;  %v140_v24 = vmul.f32 %v138_v9, %v138_v9 }
  0x17   :  { %v59_v30 = vstv %s211_s5  ;;  %v46_v32 = vadd.f32 %v45_v29, %v43_v27  ;;  %s220_s19 = sld [smem:[#allocation2 + $0x3]] }
  0x18   :  { %v71_v21 = vadd.f32 %v70_v16, %v67_v19  ;;  %v60_v33 = vadd.f32 %v59_v30, %v57_v28  ;;  %v80_v35 = vstv %s216_s6  ;;  %s266_s6 = smov [#allocation5]  }
  0x19   :  { %v87_v36 = vstv %s218_s7  ;;  %v81_v41 = vmul.f32 %v80_v35, %v46_v32  ;;  %v117_v32 = vmul.f32 %v116_v23, %v116_v23 }
  0x1a   :  { %v74_v26 = vadd.f32 %v73_v20, %v71_v21  ;;  %v88_v42 = vmul.f32 %v87_v36, %v60_v33  ;;  %v84_v46 = vstv %s217_s8  ;;  %v120_v33 = vld [vmem:[%s330_s1 + $0x7] sm:$0x1]  ;;  %s181_s1 = sld [smem:[#allocation2]] }
  0x1b   :  { %v91_v47 = vstv %s219_s11  ;;  %vm121_vm0 = vcmp.gt.f32.partialorder %v120_v33, 0.5 }
  0x1c   :  { %227 = vrcp.f32 %v74_v26  ;;  %s29_s15 = smul.f32 %s203_s12, %s203_s12 }
  0x1d   :  { %229 = vpow2.f32 %v152_v60  ;;  %v143_v2 = vstv %s220_s19 }
  0x1e   :  { %v99_v59 = vstv %s29_s15  ;;  %v144_v5 = vmul.f32 %v143_v2, %v134_v31  ;;  %v145_v6 = vmul.f32 %v143_v2, %v135_v37 }
  0x20   :  { %v156_v15 = vperm.slane %v144_v5, 2  ;;  %v157_v16 = vperm.slane %v145_v6, 2  ;;  %s182_s26 = smul.f32 %s181_s1, %s181_s1 }
  0x22   :  { %v228_v34 = vpop.eup %227 }
  0x23   :  { %v76_v39 = vmul.f32 %v228_v34, %v74_v26  ;;  %v230_v7 = vpop.eup %229  ;;  %v141_v26 = vmul.f32 %v139_v14, %v139_v14 }
  0x24   :  { %v158_v27 = vmul.f32 %v230_v7, %v156_v15 }
  0x25   :  { %v77_v40 = vsub.f32 2.0, %v76_v39 }
  0x27   :  { %v78_v45 = vmul.f32 %v228_v34, %v77_v40  ;;  %v160_v34 = vadd.f32 %v158_v27, %v140_v24 }
  0x29   :  { %v82_v48 = vmul.f32 %v81_v41, %v78_v45  ;;  %v89_v49 = vmul.f32 %v88_v42, %v78_v45  ;;  %v164_v38 = vrot.slane %v160_v34, 3 }
  0x2b   :  { %v85_v54 = vadd.f32 %v84_v46, %v82_v48  ;;  %v92_v55 = vadd.f32 %v91_v47, %v89_v49  ;;  %v169_v42 = vsel %vm168_vm2, %v164_v38, 0.0 }
  0x2d   :  { %v94_v56 = vsub.f32 %v93_v51, %v85_v54  ;;  %v96_v57 = vsub.f32 %v95_v52, %v92_v55 }
  0x2f   :  { %v97_v61 = vmul.f32 %v94_v56, %v94_v56  ;;  %v98_v62 = vmul.f32 %v96_v57, %v96_v57 }
  0x31   :  { %v101_v63 = vadd.f32 %v99_v59, %v97_v61  ;;  %v108_v0 = vadd.f32 %v99_v59, %v98_v62  ;;  %v100_v19 = vmul.f32 %v99_v59, %v97_v61  ;;  %v107_v21 = vmul.f32 %v99_v59, %v98_v62 }
  0x33   :  { %231 = vrcp.f32 %v101_v63 }
  0x34   :  { %233 = vrcp.f32 %v108_v0 }
  0x35   :  { %235 = vpow2.f32 %v154_v1 }
  0x39   :  { %v232_v8 = vpop.eup %231 }
  0x3a   :  { %v234_v10 = vpop.eup %233  ;;  %v103_v11 = vmul.f32 %v232_v8, %v101_v63 }
  0x3b   :  { %v236_v17 = vpop.eup %235  ;;  %v110_v18 = vmul.f32 %v234_v10, %v108_v0 }
  0x3c   :  { %v104_v20 = vsub.f32 2.0, %v103_v11  ;;  %v159_v28 = vmul.f32 %v236_v17, %v157_v16 }
  0x3d   :  { %v111_v22 = vsub.f32 2.0, %v110_v18 }
  0x3e   :  { %v105_v25 = vmul.f32 %v232_v8, %v104_v20  ;;  %v161_v35 = vadd.f32 %v159_v28, %v141_v26 }
  0x3f   :  { %v112_v29 = vmul.f32 %v234_v10, %v111_v22 }
  0x40   :  { %v106_v30 = vmul.f32 %v105_v25, %v100_v19  ;;  %v165_v39 = vrot.slane %v161_v35, 3 }
  0x41   :  { %v113_v31 = vmul.f32 %v112_v29, %v107_v21 }
  0x42   :  { %v170_v43 = vsel %vm168_vm2, %v165_v39, 0.0 }
  0x43   :  { %v118_v36 = vadd.f32 %v113_v31, %v106_v30  ;;  %v171_v44 = vadd.f32 %v170_v43, %v169_v42 }
  0x45   :  { %v119_v37 = vmul.f32 %v118_v36, %v117_v32 }
  0x47   :  { %v122_v40 = vsel %vm121_vm0, %v119_v37, 0.0 }
  0x48   :  { %v124_v41 = vsel %vm123_vm1, %v122_v40, 0.0 }
  0x49   :  { %125 = vadd.xlane.f32.xlu0 %v124_v41 }
  0x51   :  { %172 = vadd.xlane.f32.xlu0 %v171_v44 }
  0xbc   :  { %v126_v45 = vpop.xlane.xlu0 %125 }
  0xbd   :  { %v127_v46 = vrot.slane %v126_v45, 4 }
  0xbf   :  { %v128_v47 = vadd.f32 %v127_v46, %v126_v45 }
  0xc1   :  { %v129_v48 = vrot.slane %v128_v47, 2 }
  0xc3   :  { %v130_v49 = vadd.f32 %v129_v48, %v128_v47 }
  0xc4   :  { %v173_v50 = vpop.xlane.xlu0 %172 }
  0xc5   :  { %v174_v51 = vrot.slane %v173_v50, 4  ;;  %v131_v52 = vrot.slane %v130_v49, 1 }
  0xc7   :  { %v175_v53 = vadd.f32 %v174_v51, %v173_v50  ;;  %v132_v54 = vadd.f32 %v131_v52, %v130_v49 }
  0xc9   :  { %v176_v55 = vrot.slane %v175_v53, 2  ;;  %221 = vpush %v132_v54 }
  0xcb   :  { %v177_v56 = vadd.f32 %v176_v55, %v175_v53 }
  0xcd   :  { %v178_v57 = vrot.slane %v177_v56, 1 }
  0xcf   :  { %v179_v58 = vadd.f32 %v178_v57, %v177_v56 }
  0xd1   :  { %223 = vpush %v179_v58 }
  0xfa   :  { %s222_s0 = spop %221 }
  0xfb   :  { %s183_s30 = smul.f32 %s222_s0, %s182_s26 }
 0x102   :  { %s224_s4 = spop %223 }
 0x103   :  { %s184_s5 = sadd.f32 %s224_s4, %s183_s30 }
 0x105   :  { %186 = sst [smem:[#allocation5]] %s184_s5 }
 0x106   :  { %195 = dma.smem_to_hbm %s266_s6, 16, %s193_s29, [#allocation3]  }
 0x107   :  { %263 = dma.done.wait [#allocation3], 16  }
 0x108   :  { %264 = vsyncadd [#allocation3], 4294967280 }
 0x109   :  { %200 = sfence }
 0x10a   :  { %201 = vsyncpa [#allocation3], 1 }
 0x10b   :  { %202 = vsyncpa [#allocation4], 1 }

</bundles_post_ra>
